<compile_context>
chip_gen: v7x
topology: tpu7x:2x2x1
jax: 0.10.0
libtpu: 0.0.40
codegen_flags: <defaults>
</compile_context>

<pallas_src>
import jax
import jax.numpy as jnp
from jax.experimental import pallas as pl
from jax.experimental.pallas import tpu as pltpu
from jax.scipy.linalg import block_diag

# ---- model hyper-params (synthetic "config") --------------------------------
B = 8            # batch
D = 32           # x_dim  (feature dimension)
K = 4            # num_trans
HT = 64          # hidden width of each transformation MLP
HE = 64          # hidden width of encoder MLP
Z = 16           # enc_zdim
TRANS_TYPE = "residual"   # matches config['trans_type'] == 'residual'


# ---- Pallas kernel -----------------------------------------------------------
def feat_neutralad_kernel(x_ref, w1p_ref, b1p_ref, w2p_ref, xinj_ref, b2a_ref,
                          we1bd_ref, be1bd_ref, we2bd_ref, be2bd_ref, out_ref):
    x = x_ref[...]                                                  # (tb, D)

    # K transformation first layers packed along lanes: (tb,D)@(D,K*HT)
    h = jnp.maximum(
        jnp.dot(x, w1p_ref[...], preferred_element_type=jnp.float32)
        + b1p_ref[...], 0.0)                                        # (tb, K*HT)

    # Second layers (block-diag, shifted one D-block right) + injection of x
    # into every branch (identity branch and the K residual adds) — both ride
    # the MXU, so there is no lane slicing / sublane concat in the kernel.
    xc = (jnp.dot(h, w2p_ref[...], preferred_element_type=jnp.float32)
          + jnp.dot(x, xinj_ref[...], preferred_element_type=jnp.float32)
          + b2a_ref[...])                                           # (tb,(K+1)*D)

    # Shared encoder, block-diagonalized over the K+1 lane-packed branches.
    e = jnp.maximum(
        jnp.dot(xc, we1bd_ref[...], preferred_element_type=jnp.float32)
        + be1bd_ref[...], 0.0)                                      # (tb,(K+1)*HE)
    out_ref[...] = (jnp.dot(e, we2bd_ref[...],
                            preferred_element_type=jnp.float32)
                    + be2bd_ref[...])                               # (tb,(K+1)*Z)


# ---- one-time host-side weight packing (call once, NOT per forward) ----------
def pack_params(params):
    w1, b1, w2, b2 = params["w1"], params["b1"], params["w2"], params["b2"]
    we1, be1, we2, be2 = (params["we1"], params["be1"],
                          params["we2"], params["be2"])
    f32 = jnp.float32

    # K first layers packed along lanes: column block k == w1[k].
    w1p = jnp.transpose(w1, (1, 0, 2)).reshape(D, K * HT).astype(f32)
    b1p = b1.reshape(1, K * HT).astype(f32)

    # Second layers: block-diag(w2[0..K-1]) shifted one D-block right so that
    # branch 0 (the untransformed x) occupies lane block 0.
    w2p = jnp.concatenate(
        [jnp.zeros((K * HT, D), f32), block_diag(*w2).astype(f32)], axis=1)
    b2a = jnp.concatenate(
        [jnp.zeros((1, D), f32), b2.reshape(1, K * D).astype(f32)], axis=1)
    # x-injection: identity into every lane block (branch 0 = x itself,
    # branches 1..K = residual "+ x") — the residual now rides the MXU.
    xinj = jnp.tile(jnp.eye(D, dtype=f32), (1, K + 1))

    # Shared encoder block-diagonalized over the K+1 lane-packed branches.
    eye_b = jnp.eye(K + 1, dtype=f32)
    we1bd = jnp.kron(eye_b, we1.astype(f32))
    be1bd = jnp.tile(be1.reshape(1, HE).astype(f32), (1, K + 1))
    we2bd = jnp.kron(eye_b, we2.astype(f32))
    be2bd = jnp.tile(be2.reshape(1, Z).astype(f32), (1, K + 1))

    # TODO(synk): block-diag zero-fraction / VMEM grows ~K^2; switch to a
    # batched lax.dot_general if K or D grows significantly.
    return (w1p, b1p, w2p, xinj, b2a, we1bd, be1bd, we2bd, be2bd)


def _round_up(n, m):
    return (n + m - 1) // m * m


@jax.jit
def feat_neutralad_forward(x, packed):
    """x: (batch, D) float -> zs: (batch, K+1, Z), matching the PyTorch forward."""
    x = x.astype(jnp.float32)
    bx = x.shape[0]
    tb = 128 if bx >= 128 else _round_up(bx, 8)      # sublane-aligned row tile
    bp = _round_up(bx, tb)
    if bp != bx:
        x = jnp.pad(x, ((0, bp - bx), (0, 0)))

    def resident(w):  # full block + constant index_map => weight stays in VMEM
        return pl.BlockSpec(w.shape, lambda i: (0, 0))

    z_flat = pl.pallas_call(
        feat_neutralad_kernel,
        out_shape=jax.ShapeDtypeStruct((bp, (K + 1) * Z), jnp.float32),
        grid=(bp // tb,),
        in_specs=[pl.BlockSpec((tb, D), lambda i: (i, 0))]
                 + [resident(w) for w in packed],
        out_specs=pl.BlockSpec((tb, (K + 1) * Z), lambda i: (i, 0)),
        compiler_params=pltpu.CompilerParams(
            dimension_semantics=("parallel",)),
    )(x, *packed)

    # lane-packed branches -> (batch, K+1, Z): contiguous reshape, no transpose.
    return z_flat[:bx].reshape(bx, K + 1, Z)


# ---- pure-JAX reference (mirrors the PyTorch forward) -------------------------
def reference_forward(x, params):
    outs = [x]
    for k in range(K):
        h = jnp.maximum(x @ params["w1"][k] + params["b1"][k, 0], 0.0)
        mask = h @ params["w2"][k] + params["b2"][k, 0]
        outs.append(mask + x)                            # residual
    x_cat = jnp.stack(outs, axis=1).reshape(-1, D)       # (B*(K+1), D)
    e = jnp.maximum(x_cat @ params["we1"] + params["be1"][0], 0.0)
    z = e @ params["we2"] + params["be2"][0]
    return z.reshape(x.shape[0], K + 1, Z)


# ---- deterministic parameter init (PyTorch-Linear-style uniform) --------------
def init_params(key):
    def lin(key, fan_in, shape):
        bound = 1.0 / jnp.sqrt(fan_in)
        return jax.random.uniform(key, shape, jnp.float32, -bound, bound)

    ks = jax.random.split(key, 8)
    return {
        "w1":  lin(ks[0], D,  (K, D, HT)),
        "b1":  lin(ks[1], D,  (K, 1, HT)),
        "w2":  lin(ks[2], HT, (K, HT, D)),
        "b2":  lin(ks[3], HT, (K, 1, D)),
        "we1": lin(ks[4], D,  (D, HE)),
        "be1": lin(ks[5], D,  (1, HE)),
        "we2": lin(ks[6], HE, (HE, Z)),
        "be2": lin(ks[7], HE, (1, Z)),
    }


if __name__ == "__main__":
    key = jax.random.PRNGKey(0)
    k_x, k_p = jax.random.split(key)
    x = jax.random.normal(k_x, (B, D), jnp.float32)
    params = init_params(k_p)

    packed = pack_params(params)            # one-time packing, outside the jit
    zs = feat_neutralad_forward(x, packed)
    zs = jax.block_until_ready(zs)

    ref = reference_forward(x, params)
    assert zs.shape == (B, K + 1, Z), zs.shape
    # residual rides the MXU now -> accumulation order differs slightly
    assert jnp.allclose(zs, ref, atol=1e-3, rtol=1e-3), "mismatch vs reference"

    print("KERNEL_OK")
</pallas_src>

<mosaic_0001>
module attributes {stable_mosaic.version = 11 : i64} {
  func.func @feat_neutralad_kernel(%arg0: i32, %arg1: memref<8x32xf32, #tpu.memory_space<vmem>>, %arg2: memref<32x256xf32, #tpu.memory_space<vmem>>, %arg3: memref<1x256xf32, #tpu.memory_space<vmem>>, %arg4: memref<256x160xf32, #tpu.memory_space<vmem>>, %arg5: memref<32x160xf32, #tpu.memory_space<vmem>>, %arg6: memref<1x160xf32, #tpu.memory_space<vmem>>, %arg7: memref<160x320xf32, #tpu.memory_space<vmem>>, %arg8: memref<1x320xf32, #tpu.memory_space<vmem>>, %arg9: memref<320x80xf32, #tpu.memory_space<vmem>>, %arg10: memref<1x80xf32, #tpu.memory_space<vmem>>, %arg11: memref<8x80xf32, #tpu.memory_space<vmem>>) attributes {dimension_semantics = [#tpu.dimension_semantics<parallel>], iteration_bounds = array<i64: 1>, scalar_prefetch = 0 : i64, scratch_operands = 0 : i64, tpu.core_type = #tpu.core_type<tc>, window_params = [{transform_indices = @transform_0, window_bounds = array<i64: 8, 32>}, {pipeline_mode = #tpu.pipeline_mode<synchronous>, transform_indices = @transform_1, window_bounds = array<i64: 32, 256>}, {pipeline_mode = #tpu.pipeline_mode<synchronous>, transform_indices = @transform_2, window_bounds = array<i64: 1, 256>}, {pipeline_mode = #tpu.pipeline_mode<synchronous>, transform_indices = @transform_3, window_bounds = array<i64: 256, 160>}, {pipeline_mode = #tpu.pipeline_mode<synchronous>, transform_indices = @transform_4, window_bounds = array<i64: 32, 160>}, {pipeline_mode = #tpu.pipeline_mode<synchronous>, transform_indices = @transform_5, window_bounds = array<i64: 1, 160>}, {pipeline_mode = #tpu.pipeline_mode<synchronous>, transform_indices = @transform_6, window_bounds = array<i64: 160, 320>}, {pipeline_mode = #tpu.pipeline_mode<synchronous>, transform_indices = @transform_7, window_bounds = array<i64: 1, 320>}, {pipeline_mode = #tpu.pipeline_mode<synchronous>, transform_indices = @transform_8, window_bounds = array<i64: 320, 80>}, {pipeline_mode = #tpu.pipeline_mode<synchronous>, transform_indices = @transform_9, window_bounds = array<i64: 1, 80>}, {transform_indices = @transform_10, window_bounds = array<i64: 8, 80>}]} {
    %c0 = arith.constant 0 : index
    %c0_0 = arith.constant 0 : index
    %0 = vector.load %arg1[%c0, %c0_0] : memref<8x32xf32, #tpu.memory_space<vmem>>, vector<8x32xf32>
    %c0_1 = arith.constant 0 : index
    %c0_2 = arith.constant 0 : index
    %1 = vector.load %arg2[%c0_1, %c0_2] : memref<32x256xf32, #tpu.memory_space<vmem>>, vector<32x256xf32>
    %cst = arith.constant dense<0.000000e+00> : vector<8x256xf32>
    %2 = tpu.matmul %0, %1, %cst {dimension_numbers = #tpu.dot_dimension_numbers<[1], [0], [0], [1], [0, 0, 1, 1], [], []>} : vector<8x32xf32>, vector<32x256xf32>, vector<8x256xf32> -> vector<8x256xf32>
    %c0_3 = arith.constant 0 : index
    %c0_4 = arith.constant 0 : index
    %3 = vector.load %arg3[%c0_3, %c0_4] : memref<1x256xf32, #tpu.memory_space<vmem>>, vector<1x256xf32>
    %4 = vector.broadcast %3 : vector<1x256xf32> to vector<8x256xf32>
    %5 = arith.addf %2, %4 : vector<8x256xf32>
    %cst_5 = arith.constant 0.000000e+00 : f32
    %6 = vector.broadcast %cst_5 : f32 to vector<8x256xf32>
    %7 = arith.maximumf %5, %6 : vector<8x256xf32>
    %c0_6 = arith.constant 0 : index
    %c0_7 = arith.constant 0 : index
    %8 = vector.load %arg4[%c0_6, %c0_7] : memref<256x160xf32, #tpu.memory_space<vmem>>, vector<256x160xf32>
    %cst_8 = arith.constant dense<0.000000e+00> : vector<8x160xf32>
    %9 = tpu.matmul %7, %8, %cst_8 {dimension_numbers = #tpu.dot_dimension_numbers<[1], [0], [0], [1], [0, 0, 1, 1], [], []>} : vector<8x256xf32>, vector<256x160xf32>, vector<8x160xf32> -> vector<8x160xf32>
    %c0_9 = arith.constant 0 : index
    %c0_10 = arith.constant 0 : index
    %10 = vector.load %arg5[%c0_9, %c0_10] : memref<32x160xf32, #tpu.memory_space<vmem>>, vector<32x160xf32>
    %cst_11 = arith.constant dense<0.000000e+00> : vector<8x160xf32>
    %11 = tpu.matmul %0, %10, %cst_11 {dimension_numbers = #tpu.dot_dimension_numbers<[1], [0], [0], [1], [0, 0, 1, 1], [], []>} : vector<8x32xf32>, vector<32x160xf32>, vector<8x160xf32> -> vector<8x160xf32>
    %12 = arith.addf %9, %11 : vector<8x160xf32>
    %c0_12 = arith.constant 0 : index
    %c0_13 = arith.constant 0 : index
    %13 = vector.load %arg6[%c0_12, %c0_13] : memref<1x160xf32, #tpu.memory_space<vmem>>, vector<1x160xf32>
    %14 = vector.broadcast %13 : vector<1x160xf32> to vector<8x160xf32>
    %15 = arith.addf %12, %14 : vector<8x160xf32>
    %c0_14 = arith.constant 0 : index
    %c0_15 = arith.constant 0 : index
    %16 = vector.load %arg7[%c0_14, %c0_15] : memref<160x320xf32, #tpu.memory_space<vmem>>, vector<160x320xf32>
    %cst_16 = arith.constant dense<0.000000e+00> : vector<8x320xf32>
    %17 = tpu.matmul %15, %16, %cst_16 {dimension_numbers = #tpu.dot_dimension_numbers<[1], [0], [0], [1], [0, 0, 1, 1], [], []>} : vector<8x160xf32>, vector<160x320xf32>, vector<8x320xf32> -> vector<8x320xf32>
    %c0_17 = arith.constant 0 : index
    %c0_18 = arith.constant 0 : index
    %18 = vector.load %arg8[%c0_17, %c0_18] : memref<1x320xf32, #tpu.memory_space<vmem>>, vector<1x320xf32>
    %19 = vector.broadcast %18 : vector<1x320xf32> to vector<8x320xf32>
    %20 = arith.addf %17, %19 : vector<8x320xf32>
    %cst_19 = arith.constant 0.000000e+00 : f32
    %21 = vector.broadcast %cst_19 : f32 to vector<8x320xf32>
    %22 = arith.maximumf %20, %21 : vector<8x320xf32>
    %c0_20 = arith.constant 0 : index
    %c0_21 = arith.constant 0 : index
    %23 = vector.load %arg9[%c0_20, %c0_21] : memref<320x80xf32, #tpu.memory_space<vmem>>, vector<320x80xf32>
    %cst_22 = arith.constant dense<0.000000e+00> : vector<8x80xf32>
    %24 = tpu.matmul %22, %23, %cst_22 {dimension_numbers = #tpu.dot_dimension_numbers<[1], [0], [0], [1], [0, 0, 1, 1], [], []>} : vector<8x320xf32>, vector<320x80xf32>, vector<8x80xf32> -> vector<8x80xf32>
    %c0_23 = arith.constant 0 : index
    %c0_24 = arith.constant 0 : index
    %25 = vector.load %arg10[%c0_23, %c0_24] : memref<1x80xf32, #tpu.memory_space<vmem>>, vector<1x80xf32>
    %26 = vector.broadcast %25 : vector<1x80xf32> to vector<8x80xf32>
    %27 = arith.addf %24, %26 : vector<8x80xf32>
    %c0_25 = arith.constant 0 : index
    %c0_26 = arith.constant 0 : index
    %28 = vector.load %arg11[%c0_25, %c0_26] : memref<8x80xf32, #tpu.memory_space<vmem>>, vector<8x80xf32>
    tpu.vector_store %arg11[%c0_25, %c0_26], %27 {strides = array<i32>} : memref<8x80xf32, #tpu.memory_space<vmem>>, vector<8x80xf32>,
    return
  }
  func.func @transform_0(%arg0: i32) -> (i32, i32) {
    %c0_i32 = arith.constant 0 : i32
    %c0_i32_0 = arith.constant 0 : i32
    return %arg0, %c0_i32 : i32, i32
  }
  func.func @transform_1(%arg0: i32) -> (i32, i32) {
    %c0_i32 = arith.constant 0 : i32
    %c0_i32_0 = arith.constant 0 : i32
    %c0_i32_1 = arith.constant 0 : i32
    return %c0_i32, %c0_i32_0 : i32, i32
  }
  func.func @transform_2(%arg0: i32) -> (i32, i32) {
    %c0_i32 = arith.constant 0 : i32
    %c0_i32_0 = arith.constant 0 : i32
    %c0_i32_1 = arith.constant 0 : i32
    return %c0_i32, %c0_i32_0 : i32, i32
  }
  func.func @transform_3(%arg0: i32) -> (i32, i32) {
    %c0_i32 = arith.constant 0 : i32
    %c0_i32_0 = arith.constant 0 : i32
    %c0_i32_1 = arith.constant 0 : i32
    return %c0_i32, %c0_i32_0 : i32, i32
  }
  func.func @transform_4(%arg0: i32) -> (i32, i32) {
    %c0_i32 = arith.constant 0 : i32
    %c0_i32_0 = arith.constant 0 : i32
    %c0_i32_1 = arith.constant 0 : i32
    return %c0_i32, %c0_i32_0 : i32, i32
  }
  func.func @transform_5(%arg0: i32) -> (i32, i32) {
    %c0_i32 = arith.constant 0 : i32
    %c0_i32_0 = arith.constant 0 : i32
    %c0_i32_1 = arith.constant 0 : i32
    return %c0_i32, %c0_i32_0 : i32, i32
  }
  func.func @transform_6(%arg0: i32) -> (i32, i32) {
    %c0_i32 = arith.constant 0 : i32
    %c0_i32_0 = arith.constant 0 : i32
    %c0_i32_1 = arith.constant 0 : i32
    return %c0_i32, %c0_i32_0 : i32, i32
  }
  func.func @transform_7(%arg0: i32) -> (i32, i32) {
    %c0_i32 = arith.constant 0 : i32
    %c0_i32_0 = arith.constant 0 : i32
    %c0_i32_1 = arith.constant 0 : i32
    return %c0_i32, %c0_i32_0 : i32, i32
  }
  func.func @transform_8(%arg0: i32) -> (i32, i32) {
    %c0_i32 = arith.constant 0 : i32
    %c0_i32_0 = arith.constant 0 : i32
    %c0_i32_1 = arith.constant 0 : i32
    return %c0_i32, %c0_i32_0 : i32, i32
  }
  func.func @transform_9(%arg0: i32) -> (i32, i32) {
    %c0_i32 = arith.constant 0 : i32
    %c0_i32_0 = arith.constant 0 : i32
    %c0_i32_1 = arith.constant 0 : i32
    return %c0_i32, %c0_i32_0 : i32, i32
  }
  func.func @transform_10(%arg0: i32) -> (i32, i32) {
    %c0_i32 = arith.constant 0 : i32
    %c0_i32_0 = arith.constant 0 : i32
    return %arg0, %c0_i32 : i32, i32
  }
}

</mosaic_0001>

<bundles_post_ra>
// kernel: feat_neutralad_forward.1
= control target key start
LH: loop header
LB: loop body
LE: loop exit
PB: predicated region body
PF: predicated region fallthrough
CT: control target
= control target key end

     0   :  { %v1050_v3 = vmov 0.0   ;;  %vm56_vm0 = vcmask 261120   ;;  %vm1052_vm1 = vmmov 0   ;;  %vm632_vm2 = vcmask 523264   ;;  %s1702_s1 = inlined_call_operand.vmem [shape: f32[32,256], index: 1, kind: input, shape index: {}]   ;;  %s1703_s4 = inlined_call_operand.vmem [shape: f32[32,160], index: 4, kind: input, shape index: {}]   ;;  %s1704_s3 = inlined_call_operand.vmem [shape: f32[256,160], index: 3, kind: input, shape index: {}]   ;;  %s1705_s0 = inlined_call_operand.vmem [shape: f32[8,32], index: 0, kind: input, shape index: {}]   ;;  %s1706_s6 = inlined_call_operand.vmem [shape: f32[160,320], index: 6, kind: input, shape index: {}]   ;;  %s1707_s2 = inlined_call_operand.vmem [shape: f32[1,256], index: 2, kind: input, shape index: {}]   ;;  %s1708_s8 = inlined_call_operand.vmem [shape: f32[320,80], index: 8, kind: input, shape index: {}]   ;;  %s1709_s5 = inlined_call_operand.vmem [shape: f32[1,160], index: 5, kind: input, shape index: {}]   ;;  %s1710_s7 = inlined_call_operand.vmem [shape: f32[1,320], index: 7, kind: input, shape index: {}]   ;;  %s1711_s9 = inlined_call_operand.vmem [shape: f32[1,80], index: 9, kind: input, shape index: {}]   ;;  %s1712_s10 = inlined_call_operand.vmem [shape: f32[8,80], index: 10, kind: output, shape index: {}]  }
   0x1   :  { %v37_v0 = vld [vmem:[%s1702_s1 + $0x8] sm:$0xff]  ;;  %v39_v1 = vld [vmem:[%s1702_s1 + $0x18] sm:$0xff]  ;;  %v36_v2 = vld [vmem:[%s1702_s1] sm:$0xff]  ;;  %124 = vmatprep.mubr.f32.mxu0 %v1050_v3  ;;  %269 = vmatprep.mubr.f32.mxu1 %v1050_v3  ;;  %vm776_vm3 = vcmask 654336  }
   0x2   :  { %v851_v4 = vpack.c.bf16 %v39_v1, %v37_v0  ;;  %v38_v5 = vld [vmem:[%s1702_s1 + $0x10] sm:$0xff]  ;;  %v41_v6 = vld [vmem:[%s1702_s1 + $0x28] sm:$0xff]  ;;  %v43_v7 = vld [vmem:[%s1702_s1 + $0x38] sm:$0xff] }
   0x3   :  { %v853_v8 = vpack.c.bf16 %v38_v5, %v36_v2  ;;  %v855_v9 = vpack.c.bf16 %v43_v7, %v41_v6  ;;  %v40_v10 = vld [vmem:[%s1702_s1 + $0x20] sm:$0xff]  ;;  %v42_v11 = vld [vmem:[%s1702_s1 + $0x30] sm:$0xff]  ;;  %v198_v12 = vld [vmem:[%s1703_s4 + $0x8] sm:$0xff] }
   0x4   :  { %852 = vmatprep.subr.bf16.mxu0 %v851_v4  ;;  %v200_v13 = vld [vmem:[%s1703_s4 + $0x18] sm:$0xff]  ;;  %v197_v14 = vld [vmem:[%s1703_s4] sm:$0xff]  ;;  %v857_v15 = vpack.c.bf16 %v42_v11, %v40_v10  ;;  %v199_v17 = vld [vmem:[%s1703_s4 + $0x10] sm:$0xff] }
   0x5   :  { %854 = vmatpush1.bf16.msra.mxu0 %v853_v8  ;;  %v859_v16 = vpack.c.bf16 %v200_v13, %v198_v12  ;;  %v202_v18 = vld [vmem:[%s1703_s4 + $0x28] sm:$0xff]  ;;  %v204_v19 = vld [vmem:[%s1703_s4 + $0x38] sm:$0xff]  ;;  %v861_v20 = vpack.c.bf16 %v199_v17, %v197_v14  ;;  %v201_v22 = vld [vmem:[%s1703_s4 + $0x20] sm:$0xff] }
   0x6   :  { %856 = vmatprep.subr.bf16.mxu0 %v855_v9  ;;  %v863_v21 = vpack.c.bf16 %v204_v19, %v202_v18  ;;  %v203_v23 = vld [vmem:[%s1703_s4 + $0x30] sm:$0xff]  ;;  %v134_v24 = vld [vmem:[%s1704_s3 + $0x8] sm:$0xff]  ;;  %v136_v25 = vld [vmem:[%s1704_s3 + $0x18] sm:$0xff] }
   0x7   :  { %860 = vmatprep.subr.bf16.mxu1 %v859_v16  ;;  %v865_v26 = vpack.c.bf16 %v203_v23, %v201_v22  ;;  %v35_v27 = vld [vmem:[%s1705_s0] sm:$0xff]  ;;  %v867_v28 = vpack.c.bf16 %v136_v25, %v134_v24  ;;  %v135_v30 = vld [vmem:[%s1704_s3 + $0x10] sm:$0xff]  ;;  %v138_v31 = vld [vmem:[%s1704_s3 + $0x28] sm:$0xff] }
   0x8   :  { %862 = vmatpush1.bf16.msra.mxu1 %v861_v20  ;;  %v133_v29 = vld [vmem:[%s1704_s3] sm:$0xff]  ;;  %v140_v32 = vld [vmem:[%s1704_s3 + $0x38] sm:$0xff]  ;;  %v139_v36 = vld [vmem:[%s1704_s3 + $0x30] sm:$0xff] }
   0x9   :  { %858 = vmatpush1.bf16.msra.mxu0 %v857_v15  ;;  %864 = vmatprep.subr.bf16.mxu1 %v863_v21  ;;  %v869_v33 = vpack.c.bf16 %v135_v30, %v133_v29  ;;  %v871_v34 = vpack.c.bf16 %v140_v32, %v138_v31  ;;  %v137_v35 = vld [vmem:[%s1704_s3 + $0x20] sm:$0xff]  ;;  %v142_v37 = vld [vmem:[%s1704_s3 + $0x48] sm:$0xff]  ;;  %v144_v38 = vld [vmem:[%s1704_s3 + $0x58] sm:$0xff] }
   0xa   :  { %v873_v39 = vpack.c.bf16 %v139_v36, %v137_v35  ;;  %v875_v40 = vpack.c.bf16 %v144_v38, %v142_v37  ;;  %v141_v41 = vld [vmem:[%s1704_s3 + $0x40] sm:$0xff]  ;;  %v143_v42 = vld [vmem:[%s1704_s3 + $0x50] sm:$0xff]  ;;  %v146_v43 = vld [vmem:[%s1704_s3 + $0x68] sm:$0xff] }
   0xb   :  { %v148_v44 = vld [vmem:[%s1704_s3 + $0x78] sm:$0xff]  ;;  %v877_v45 = vpack.c.bf16 %v143_v42, %v141_v41  ;;  %v145_v47 = vld [vmem:[%s1704_s3 + $0x60] sm:$0xff]  ;;  %v147_v48 = vld [vmem:[%s1704_s3 + $0x70] sm:$0xff] }
   0xc   :  { %782 = vmatmul.mubr.msk.f32.vlgmr.msra.gmra.mrb[0].mxu0 %vm56_vm0, %v35_v27  ;;  %866 = vmatpush1.bf16.msra.mxu1 %v865_v26  ;;  %v879_v46 = vpack.c.bf16 %v148_v44, %v146_v43  ;;  %v150_v49 = vld [vmem:[%s1704_s3 + $0x88] sm:$0xff]  ;;  %v152_v50 = vld [vmem:[%s1704_s3 + $0x98] sm:$0xff]  ;;  %v881_v51 = vpack.c.bf16 %v147_v48, %v145_v47  ;;  %v149_v53 = vld [vmem:[%s1704_s3 + $0x80] sm:$0xff] }
   0xd   :  { %868 = vmatprep.subr.bf16.mxu1 %v867_v28  ;;  %v883_v52 = vpack.c.bf16 %v152_v50, %v150_v49  ;;  %v151_v54 = vld [vmem:[%s1704_s3 + $0x90] sm:$0xff]  ;;  %v154_v55 = vld [vmem:[%s1704_s3 + $0xa8] sm:$0xff]  ;;  %v156_v56 = vld [vmem:[%s1704_s3 + $0xb8] sm:$0xff] }
   0xe   :  { %v885_v57 = vpack.c.bf16 %v151_v54, %v149_v53  ;;  %v887_v58 = vpack.c.bf16 %v156_v56, %v154_v55  ;;  %v153_v59 = vld [vmem:[%s1704_s3 + $0xa0] sm:$0xff]  ;;  %v155_v60 = vld [vmem:[%s1704_s3 + $0xb0] sm:$0xff]  ;;  %v158_v61 = vld [vmem:[%s1704_s3 + $0xc8] sm:$0xff] }
   0xf   :  { %783 = vmatmul.mubr.msk.f32.vlgmr.msra.gmra.mrb[0].mxu1 %vm56_vm0, %v35_v27  ;;  %v160_v62 = vld [vmem:[%s1704_s3 + $0xd8] sm:$0xff]  ;;  %v889_v63 = vpack.c.bf16 %v155_v60, %v153_v59  ;;  %v157_v1 = vld [vmem:[%s1704_s3 + $0xc0] sm:$0xff]  ;;  %v159_v2 = vld [vmem:[%s1704_s3 + $0xd0] sm:$0xff] }
  0x10   :  { %870 = vmatpush1.bf16.msra.mxu1 %v869_v33  ;;  %v891_v0 = vpack.c.bf16 %v160_v62, %v158_v61  ;;  %v162_v4 = vld [vmem:[%s1704_s3 + $0xe8] sm:$0xff]  ;;  %v164_v5 = vld [vmem:[%s1704_s3 + $0xf8] sm:$0xff]  ;;  %v893_v6 = vpack.c.bf16 %v159_v2, %v157_v1  ;;  %v161_v8 = vld [vmem:[%s1704_s3 + $0xe0] sm:$0xff] }
  0x11   :  { %872 = vmatprep.subr.bf16.mxu1 %v871_v34  ;;  %v895_v7 = vpack.c.bf16 %v164_v5, %v162_v4  ;;  %v163_v9 = vld [vmem:[%s1704_s3 + $0xf0] sm:$0xff]  ;;  %v166_v10 = vld [vmem:[%s1704_s3 + $0x108] sm:$0xff]  ;;  %v168_v11 = vld [vmem:[%s1704_s3 + $0x118] sm:$0xff] }
  0x12   :  { %v897_v12 = vpack.c.bf16 %v163_v9, %v161_v8  ;;  %v899_v13 = vpack.c.bf16 %v168_v11, %v166_v10  ;;  %v165_v14 = vld [vmem:[%s1704_s3 + $0x100] sm:$0xff]  ;;  %v167_v15 = vld [vmem:[%s1704_s3 + $0x110] sm:$0xff]  ;;  %v170_v16 = vld [vmem:[%s1704_s3 + $0x128] sm:$0xff] }
  0x13   :  { %v172_v17 = vld [vmem:[%s1704_s3 + $0x138] sm:$0xff]  ;;  %v901_v18 = vpack.c.bf16 %v167_v15, %v165_v14  ;;  %v169_v20 = vld [vmem:[%s1704_s3 + $0x120] sm:$0xff]  ;;  %v171_v21 = vld [vmem:[%s1704_s3 + $0x130] sm:$0xff] }
  0x14   :  { %874 = vmatpush1.bf16.msra.mxu1 %v873_v39  ;;  %v903_v19 = vpack.c.bf16 %v172_v17, %v170_v16  ;;  %v174_v22 = vld [vmem:[%s1704_s3 + $0x148] sm:$0xff]  ;;  %v176_v23 = vld [vmem:[%s1704_s3 + $0x158] sm:$0xff]  ;;  %v905_v24 = vpack.c.bf16 %v171_v21, %v169_v20  ;;  %v173_v26 = vld [vmem:[%s1704_s3 + $0x140] sm:$0xff] }
  0x15   :  { %876 = vmatprep.subr.bf16.mxu1 %v875_v40  ;;  %v907_v25 = vpack.c.bf16 %v176_v23, %v174_v22  ;;  %v175_v27 = vld [vmem:[%s1704_s3 + $0x150] sm:$0xff]  ;;  %v178_v28 = vld [vmem:[%s1704_s3 + $0x168] sm:$0xff]  ;;  %v180_v29 = vld [vmem:[%s1704_s3 + $0x178] sm:$0xff] }
  0x16   :  { %v909_v30 = vpack.c.bf16 %v175_v27, %v173_v26  ;;  %v911_v31 = vpack.c.bf16 %v180_v29, %v178_v28  ;;  %v177_v32 = vld [vmem:[%s1704_s3 + $0x160] sm:$0xff]  ;;  %v179_v33 = vld [vmem:[%s1704_s3 + $0x170] sm:$0xff]  ;;  %v182_v34 = vld [vmem:[%s1704_s3 + $0x188] sm:$0xff] }
  0x17   :  { %v184_v35 = vld [vmem:[%s1704_s3 + $0x198] sm:$0xff]  ;;  %v913_v36 = vpack.c.bf16 %v179_v33, %v177_v32  ;;  %v181_v38 = vld [vmem:[%s1704_s3 + $0x180] sm:$0xff]  ;;  %v183_v39 = vld [vmem:[%s1704_s3 + $0x190] sm:$0xff] }
  0x18   :  { %878 = vmatpush1.bf16.msra.mxu1 %v877_v45  ;;  %v915_v37 = vpack.c.bf16 %v184_v35, %v182_v34  ;;  %v186_v40 = vld [vmem:[%s1704_s3 + $0x1a8] sm:$0xff]  ;;  %v188_v41 = vld [vmem:[%s1704_s3 + $0x1b8] sm:$0xff]  ;;  %v917_v42 = vpack.c.bf16 %v183_v39, %v181_v38  ;;  %v185_v44 = vld [vmem:[%s1704_s3 + $0x1a0] sm:$0xff] }
  0x19   :  { %880 = vmatprep.subr.bf16.mxu1 %v879_v46  ;;  %v919_v43 = vpack.c.bf16 %v188_v41, %v186_v40  ;;  %v187_v45 = vld [vmem:[%s1704_s3 + $0x1b0] sm:$0xff]  ;;  %v190_v46 = vld [vmem:[%s1704_s3 + $0x1c8] sm:$0xff]  ;;  %v192_v47 = vld [vmem:[%s1704_s3 + $0x1d8] sm:$0xff] }
  0x1a   :  { %v921_v48 = vpack.c.bf16 %v187_v45, %v185_v44  ;;  %v923_v49 = vpack.c.bf16 %v192_v47, %v190_v46  ;;  %v189_v50 = vld [vmem:[%s1704_s3 + $0x1c0] sm:$0xff]  ;;  %v194_v53 = vld [vmem:[%s1704_s3 + $0x1e8] sm:$0xff]  ;;  %v196_v54 = vld [vmem:[%s1704_s3 + $0x1f8] sm:$0xff] }
  0x1b   :  { %v927_v55 = vpack.c.bf16 %v196_v54, %v194_v53  ;;  %v193_v56 = vld [vmem:[%s1704_s3 + $0x1e0] sm:$0xff]  ;;  %v362_v59 = vld [vmem:[%s1706_s6 + $0x8] sm:$0xff]  ;;  %v371_v1 = vld [vmem:[%s1706_s6 + $0x50] sm:$0xff] }
  0x1c   :  { %882 = vmatpush1.bf16.msra.mxu1 %v881_v51  ;;  %v191_v51 = vld [vmem:[%s1704_s3 + $0x1d0] sm:$0xff]  ;;  %v365_v60 = vld [vmem:[%s1706_s6 + $0x20] sm:$0xff] }
  0x1d   :  { %884 = vmatprep.subr.bf16.mxu1 %v883_v52  ;;  %v925_v52 = vpack.c.bf16 %v191_v51, %v189_v50  ;;  %v361_v61 = vld [vmem:[%s1706_s6] sm:$0xff]  ;;  %v931_v62 = vpack.c.bf16 %v365_v60, %v362_v59  ;;  %v367_v5 = vld [vmem:[%s1706_s6 + $0x30] sm:$0xff]  ;;  %v46_v50 = vlaneseq }
  0x1e   :  { %v377_v8 = vld [vmem:[%s1706_s6 + $0x80] sm:$0xff]  ;;  %v383_v14 = vld [vmem:[%s1706_s6 + $0xb0] sm:$0xff] }
  0x1f   :  { %932 = vmatprep.subr.bf16.mxu0 %v931_v62  ;;  %v373_v11 = vld [vmem:[%s1706_s6 + $0x60] sm:$0xff]  ;;  %v379_v17 = vld [vmem:[%s1706_s6 + $0x90] sm:$0xff]  ;;  %v1463_v51 = vshrl.u32 %v46_v50, 7  ;;  %v366_v50 = vld [vmem:[%s1706_s6 + $0x28] sm:$0xff] }
  0x20   :  { %886 = vmatpush1.bf16.msra.mxu1 %v885_v57  ;;  %v195_v57 = vld [vmem:[%s1704_s3 + $0x1f0] sm:$0xff]  ;;  %v389_v20 = vld [vmem:[%s1706_s6 + $0xe0] sm:$0xff] }
  0x21   :  { %888 = vmatprep.subr.bf16.mxu1 %v887_v58  ;;  %v929_v58 = vpack.c.bf16 %v195_v57, %v193_v56  ;;  %v385_v23 = vld [vmem:[%s1706_s6 + $0xc0] sm:$0xff]  ;;  %v395_v26 = vld [vmem:[%s1706_s6 + $0x110] sm:$0xff]  ;;  %v1472_v54 = vsub.s32 1, %v1463_v51 }
  0x22   :  { %v391_v29 = vld [vmem:[%s1706_s6 + $0xf0] sm:$0xff]  ;;  %v401_v32 = vld [vmem:[%s1706_s6 + $0x140] sm:$0xff] }
  0x23   :  { %v397_v35 = vld [vmem:[%s1706_s6 + $0x120] sm:$0xff]  ;;  %v407_v38 = vld [vmem:[%s1706_s6 + $0x170] sm:$0xff] }
  0x24   :  { %890 = vmatpush1.bf16.msra.mxu1 %v889_v63  ;;  %v364_v63 = vld [vmem:[%s1706_s6 + $0x18] sm:$0xff]  ;;  %v403_v41 = vld [vmem:[%s1706_s6 + $0x150] sm:$0xff]  ;;  %v413_v44 = vld [vmem:[%s1706_s6 + $0x1a0] sm:$0xff] }
  0x25   :  { %892 = vmatprep.subr.bf16.mxu1 %v891_v0  ;;  %v368_v0 = vld [vmem:[%s1706_s6 + $0x38] sm:$0xff]  ;;  %v933_v2 = vpack.c.bf16 %v364_v63, %v361_v61  ;;  %v409_v47 = vld [vmem:[%s1706_s6 + $0x180] sm:$0xff] }
  0x26   :  { %v935_v4 = vpack.c.bf16 %v371_v1, %v368_v0  ;;  %v44_v53 = vld [vmem:[%s1707_s2] sm:$0x3]  ;;  %v416_v63 = vld [vmem:[%s1706_s6 + $0x1b8] sm:$0xff]  ;;  %v419_v0 = vld [vmem:[%s1706_s6 + $0x1d0] sm:$0xff] }
  0x27   :  { %934 = vmatpush1.bf16.msra.mxu0 %v933_v2  ;;  %v53_v56 = vrot.slane %v44_v53, %v1472_v54  ;;  %v967_v1 = vpack.c.bf16 %v419_v0, %v416_v63  ;;  %v415_v2 = vld [vmem:[%s1706_s6 + $0x1b0] sm:$0xff]  ;;  %v378_v63 = vld [vmem:[%s1706_s6 + $0x88] sm:$0xff] }
  0x28   :  { %894 = vmatpush1.bf16.msra.mxu1 %v893_v6  ;;  %v370_v6 = vld [vmem:[%s1706_s6 + $0x48] sm:$0xff]  ;;  %936 = vmatprep.subr.bf16.mxu0 %v935_v4 }
  0x29   :  { %896 = vmatprep.subr.bf16.mxu1 %v895_v7  ;;  %v374_v7 = vld [vmem:[%s1706_s6 + $0x68] sm:$0xff]  ;;  %v937_v9 = vpack.c.bf16 %v370_v6, %v367_v5  ;;  %v1051_v6 = vmov 0.0|0.0  }
  0x2a   :  { %v939_v10 = vpack.c.bf16 %v377_v8, %v374_v7  ;;  %v418_v4 = vld [vmem:[%s1706_s6 + $0x1c8] sm:$0xff]  ;;  %v601_v7 = vld [vmem:[%s1708_s8 + $0x80] sm:$0xff] }
  0x2b   :  { %938 = vmatpush1.bf16.msra.mxu0 %v937_v9  ;;  %v969_v5 = vpack.c.bf16 %v418_v4, %v415_v2  ;;  %v602_v8 = vld [vmem:[%s1708_s8 + $0x88] sm:$0xff]  ;;  %v585_v9 = vld [vmem:[%s1708_s8] sm:$0xff]  ;;  %v384_v2 = vld [vmem:[%s1706_s6 + $0xb8] sm:$0xff] }
  0x2c   :  { %898 = vmatpush1.bf16.msra.mxu1 %v897_v12  ;;  %v376_v12 = vld [vmem:[%s1706_s6 + $0x78] sm:$0xff]  ;;  %940 = vmatprep.subr.bf16.mxu0 %v939_v10  ;;  %v1001_v10 = vpack.c.bf16 %v602_v8, %v601_v7  ;;  %v390_v7 = vld [vmem:[%s1706_s6 + $0xe8] sm:$0xff] }
  0x2d   :  { %900 = vmatprep.subr.bf16.mxu1 %v899_v13  ;;  %v380_v13 = vld [vmem:[%s1706_s6 + $0x98] sm:$0xff]  ;;  %v941_v15 = vpack.c.bf16 %v376_v12, %v373_v11  ;;  %v586_v11 = vld [vmem:[%s1708_s8 + $0x8] sm:$0xff]  ;;  %v603_v12 = vld [vmem:[%s1708_s8 + $0x90] sm:$0xff] }
  0x2e   :  { %v943_v16 = vpack.c.bf16 %v383_v14, %v380_v13  ;;  %v604_v13 = vld [vmem:[%s1708_s8 + $0x98] sm:$0xff]  ;;  %v1003_v14 = vpack.c.bf16 %v586_v11, %v585_v9  ;;  %v393_v9 = vld [vmem:[%s1706_s6 + $0x100] sm:$0xff] }
  0x2f   :  { %942 = vmatpush1.bf16.msra.mxu0 %v941_v15  ;;  %v1005_v15 = vpack.c.bf16 %v604_v13, %v603_v12  ;;  %v399_v12 = vld [vmem:[%s1706_s6 + $0x130] sm:$0xff]  ;;  %v402_v13 = vld [vmem:[%s1706_s6 + $0x148] sm:$0xff] }
  0x30   :  { %902 = vmatpush1.bf16.msra.mxu1 %v901_v18  ;;  %v382_v18 = vld [vmem:[%s1706_s6 + $0xa8] sm:$0xff]  ;;  %944 = vmatprep.subr.bf16.mxu0 %v943_v16  ;;  %v587_v16 = vld [vmem:[%s1708_s8 + $0x10] sm:$0xff] }
  0x31   :  { %904 = vmatprep.subr.bf16.mxu1 %v903_v19  ;;  %v386_v19 = vld [vmem:[%s1706_s6 + $0xc8] sm:$0xff]  ;;  %v945_v21 = vpack.c.bf16 %v382_v18, %v379_v17  ;;  %v588_v17 = vld [vmem:[%s1708_s8 + $0x18] sm:$0xff]  ;;  %v605_v18 = vld [vmem:[%s1708_s8 + $0xa0] sm:$0xff] }
  0x32   :  { %v947_v22 = vpack.c.bf16 %v389_v20, %v386_v19  ;;  %v606_v19 = vld [vmem:[%s1708_s8 + $0xa8] sm:$0xff]  ;;  %v1007_v20 = vpack.c.bf16 %v588_v17, %v587_v16  ;;  %v408_v16 = vld [vmem:[%s1706_s6 + $0x178] sm:$0xff] }
  0x33   :  { %946 = vmatpush1.bf16.msra.mxu0 %v945_v21  ;;  %v1009_v21 = vpack.c.bf16 %v606_v19, %v605_v18  ;;  %v411_v18 = vld [vmem:[%s1706_s6 + $0x190] sm:$0xff]  ;;  %v414_v19 = vld [vmem:[%s1706_s6 + $0x1a8] sm:$0xff] }
  0x34   :  { %906 = vmatpush1.bf16.msra.mxu1 %v905_v24  ;;  %v388_v24 = vld [vmem:[%s1706_s6 + $0xd8] sm:$0xff]  ;;  %948 = vmatprep.subr.bf16.mxu0 %v947_v22  ;;  %v589_v22 = vld [vmem:[%s1708_s8 + $0x20] sm:$0xff] }
  0x35   :  { %908 = vmatprep.subr.bf16.mxu1 %v907_v25  ;;  %v392_v25 = vld [vmem:[%s1706_s6 + $0xf8] sm:$0xff]  ;;  %v949_v27 = vpack.c.bf16 %v388_v24, %v385_v23  ;;  %v590_v23 = vld [vmem:[%s1708_s8 + $0x28] sm:$0xff]  ;;  %v607_v24 = vld [vmem:[%s1708_s8 + $0xb0] sm:$0xff] }
  0x36   :  { %v951_v28 = vpack.c.bf16 %v395_v26, %v392_v25  ;;  %v608_v25 = vld [vmem:[%s1708_s8 + $0xb8] sm:$0xff]  ;;  %v1011_v26 = vpack.c.bf16 %v590_v23, %v589_v22 }
  0x37   :  { %950 = vmatpush1.bf16.msra.mxu0 %v949_v27  ;;  %v1013_v27 = vpack.c.bf16 %v608_v25, %v607_v24  ;;  %v420_v22 = vld [vmem:[%s1706_s6 + $0x1d8] sm:$0xff]  ;;  %v597_v24 = vld [vmem:[%s1708_s8 + $0x60] sm:$0xff]  ;;  %v598_v25 = vld [vmem:[%s1708_s8 + $0x68] sm:$0xff] }
  0x38   :  { %910 = vmatpush1.bf16.msra.mxu1 %v909_v30  ;;  %v394_v30 = vld [vmem:[%s1706_s6 + $0x108] sm:$0xff]  ;;  %952 = vmatprep.subr.bf16.mxu0 %v951_v28  ;;  %v591_v28 = vld [vmem:[%s1708_s8 + $0x30] sm:$0xff] }
  0x39   :  { %912 = vmatprep.subr.bf16.mxu1 %v911_v31  ;;  %v398_v31 = vld [vmem:[%s1706_s6 + $0x128] sm:$0xff]  ;;  %v953_v33 = vpack.c.bf16 %v394_v30, %v391_v29  ;;  %v592_v29 = vld [vmem:[%s1708_s8 + $0x38] sm:$0xff]  ;;  %v609_v30 = vld [vmem:[%s1708_s8 + $0xc0] sm:$0xff] }
  0x3a   :  { %v955_v34 = vpack.c.bf16 %v401_v32, %v398_v31  ;;  %v610_v31 = vld [vmem:[%s1708_s8 + $0xc8] sm:$0xff]  ;;  %v1015_v32 = vpack.c.bf16 %v592_v29, %v591_v28  ;;  %v616_v28 = vld [vmem:[%s1708_s8 + $0xf8] sm:$0xff] }
  0x3b   :  { %954 = vmatpush1.bf16.msra.mxu0 %v953_v33  ;;  %v1017_v33 = vpack.c.bf16 %v610_v31, %v609_v30  ;;  %v599_v30 = vld [vmem:[%s1708_s8 + $0x70] sm:$0xff]  ;;  %v600_v31 = vld [vmem:[%s1708_s8 + $0x78] sm:$0xff] }
  0x3c   :  { %914 = vmatpush1.bf16.msra.mxu1 %v913_v36  ;;  %v400_v36 = vld [vmem:[%s1706_s6 + $0x138] sm:$0xff]  ;;  %956 = vmatprep.subr.bf16.mxu0 %v955_v34  ;;  %v593_v34 = vld [vmem:[%s1708_s8 + $0x40] sm:$0xff] }
  0x3d   :  { %916 = vmatprep.subr.bf16.mxu1 %v915_v37  ;;  %v404_v37 = vld [vmem:[%s1706_s6 + $0x158] sm:$0xff]  ;;  %v957_v39 = vpack.c.bf16 %v400_v36, %v397_v35  ;;  %v594_v35 = vld [vmem:[%s1708_s8 + $0x48] sm:$0xff]  ;;  %v611_v36 = vld [vmem:[%s1708_s8 + $0xd0] sm:$0xff] }
  0x3e   :  { %v959_v40 = vpack.c.bf16 %v407_v38, %v404_v37  ;;  %v612_v37 = vld [vmem:[%s1708_s8 + $0xd8] sm:$0xff]  ;;  %v1019_v38 = vpack.c.bf16 %v594_v35, %v593_v34  ;;  %v618_v34 = vld [vmem:[%s1708_s8 + $0x108] sm:$0xff]  ;;  %v619_v35 = vld [vmem:[%s1708_s8 + $0x110] sm:$0xff] }
  0x3f   :  { %958 = vmatpush1.bf16.msra.mxu0 %v957_v39  ;;  %v1021_v39 = vpack.c.bf16 %v612_v37, %v611_v36  ;;  %v620_v37 = vld [vmem:[%s1708_s8 + $0x118] sm:$0xff] }
  0x40   :  { %918 = vmatpush1.bf16.msra.mxu1 %v917_v42  ;;  %v406_v42 = vld [vmem:[%s1706_s6 + $0x168] sm:$0xff]  ;;  %960 = vmatprep.subr.bf16.mxu0 %v959_v40  ;;  %v595_v40 = vld [vmem:[%s1708_s8 + $0x50] sm:$0xff] }
  0x41   :  { %920 = vmatprep.subr.bf16.mxu1 %v919_v43  ;;  %v410_v43 = vld [vmem:[%s1706_s6 + $0x188] sm:$0xff]  ;;  %v961_v45 = vpack.c.bf16 %v406_v42, %v403_v41  ;;  %v596_v41 = vld [vmem:[%s1708_s8 + $0x58] sm:$0xff]  ;;  %v613_v42 = vld [vmem:[%s1708_s8 + $0xe0] sm:$0xff] }
  0x42   :  { %v963_v46 = vpack.c.bf16 %v413_v44, %v410_v43  ;;  %v614_v43 = vld [vmem:[%s1708_s8 + $0xe8] sm:$0xff]  ;;  %v1023_v44 = vpack.c.bf16 %v596_v41, %v595_v40 }
  0x43   :  { %962 = vmatpush1.bf16.msra.mxu0 %v961_v45  ;;  %v1025_v45 = vpack.c.bf16 %v614_v43, %v613_v42  ;;  %v622_v40 = vld [vmem:[%s1708_s8 + $0x128] sm:$0xff]  ;;  %v623_v42 = vld [vmem:[%s1708_s8 + $0x130] sm:$0xff]  ;;  %v624_v43 = vld [vmem:[%s1708_s8 + $0x138] sm:$0xff] }
  0x44   :  { %922 = vmatpush1.bf16.msra.mxu1 %v921_v48  ;;  %v412_v48 = vld [vmem:[%s1706_s6 + $0x198] sm:$0xff]  ;;  %964 = vmatprep.subr.bf16.mxu0 %v963_v46  ;;  %v347_v46 = vld [vmem:[%s1709_s5] sm:$0x3] }
  0x45   :  { %924 = vmatprep.subr.bf16.mxu1 %v923_v49  ;;  %v965_v49 = vpack.c.bf16 %v412_v48, %v409_v47  ;;  %v356_v47 = vrot.slane %v347_v46, %v1472_v54 }
  0x47   :  { %966 = vmatpush1.bf16.msra.mxu0 %v965_v49  ;;  %v363_v49 = vld [vmem:[%s1706_s6 + $0x10] sm:$0xff] }
  0x48   :  { %926 = vmatpush1.bf16.msra.mxu1 %v925_v52  ;;  %v1466_v52 = vsub.s32 0, %v1463_v51  ;;  %968 = vmatprep.subr.bf16.mxu0 %v967_v1  ;;  %v381_v1 = vld [vmem:[%s1706_s6 + $0xa0] sm:$0xff] }
  0x49   :  { %928 = vmatprep.subr.bf16.mxu1 %v927_v55  ;;  %v981_v4 = vpack.c.bf16 %v384_v2, %v381_v1 }
  0x4a   :  { %v49_v55 = vrot.slane %v44_v53, %v1466_v52  ;;  %v352_v48 = vrot.slane %v347_v46, %v1466_v52 }
  0x4b   :  { %970 = vmatpush1.bf16.msra.mxu0 %v969_v5  ;;  %v387_v5 = vld [vmem:[%s1706_s6 + $0xd0] sm:$0xff] }
  0x4c   :  { %930 = vmatpush1.bf16.msra.mxu1 %v929_v58  ;;  %971 = vmatprep.subr.bf16.mxu0 %v1051_v6  ;;  %v984_v8 = vpack.c.bf16 %v390_v7, %v387_v5 }
  0x4d   :  { %1002 = vmatprep.subr.bf16.mxu1 %v1001_v10  ;;  %v396_v10 = vld [vmem:[%s1706_s6 + $0x118] sm:$0xff] }
  0x4e   :  { %v987_v11 = vpack.c.bf16 %v396_v10, %v393_v9 }
  0xdf   :  { %v126_v57 = vpop.f32.mrb[0].mxu0 }
  0xe0   :  { %v127_v58 = vadd.f32 %v126_v57, %v49_v55  ;;  %v128_v59 = vpop.f32.mrb[1].mxu0  ;;  %v972_v57 = vpack.c.bf16 %v366_v50, %v363_v49 }
  0xe1   :  { %v129_v60 = vadd.f32 %v128_v59, %v53_v56  ;;  %v369_v59 = vld [vmem:[%s1706_s6 + $0x40] sm:$0xff] }
  0xe2   :  { %v131_v62 = vmax.f32 %v127_v58, 0.0 }
  0xe3   :  { %v132_v61 = vmax.f32 %v129_v60, 0.0  ;;  %v372_v60 = vld [vmem:[%s1706_s6 + $0x58] sm:$0xff] }
  0xe5   :  { %340 = vmatprep.mubr.f32.mxu1 %v132_v61  ;;  %v975_v61 = vpack.c.bf16 %v372_v60, %v369_v59 }
  0xe6   :  { %341 = vmatmul.mubr.f32.vlgmr.msra.gmra.mrb[0].mxu1 %v131_v62  ;;  %v375_v62 = vld [vmem:[%s1706_s6 + $0x70] sm:$0xff] }
  0xe7   :  { %1004 = vmatpush3.bf16.msra.mxu1 %v1003_v14  ;;  %v978_v0 = vpack.c.bf16 %v378_v63, %v375_v62  ;;  %v990_v14 = vpack.c.bf16 %v402_v13, %v399_v12  ;;  %v786_v62 = vld [vmem:[%s1711_s9] ss:$0 sm:$0xff] }
  0xe8   :  { %1006 = vmatprep.subr.bf16.mxu1 %v1005_v15  ;;  %v405_v15 = vld [vmem:[%s1706_s6 + $0x160] sm:$0xff] }
  0xe9   :  { %v993_v17 = vpack.c.bf16 %v408_v16, %v405_v15 }
  0xeb   :  { %1008 = vmatpush3.bf16.msra.mxu1 %v1007_v20  ;;  %v996_v20 = vpack.c.bf16 %v414_v19, %v411_v18 }
  0xec   :  { %1010 = vmatprep.subr.bf16.mxu1 %v1009_v21  ;;  %v417_v21 = vld [vmem:[%s1706_s6 + $0x1c0] sm:$0xff] }
  0xed   :  { %v999_v23 = vpack.c.bf16 %v420_v22, %v417_v21 }
  0xef   :  { %1012 = vmatpush3.bf16.msra.mxu1 %v1011_v26  ;;  %v1027_v26 = vpack.c.bf16 %v598_v25, %v597_v24 }
  0xf0   :  { %1014 = vmatprep.subr.bf16.mxu1 %v1013_v27  ;;  %v615_v27 = vld [vmem:[%s1708_s8 + $0xf0] sm:$0xff] }
  0xf1   :  { %v1029_v29 = vpack.c.bf16 %v616_v28, %v615_v27 }
  0xf3   :  { %1016 = vmatpush3.bf16.msra.mxu1 %v1015_v32  ;;  %v1031_v32 = vpack.c.bf16 %v600_v31, %v599_v30 }
  0xf4   :  { %1018 = vmatprep.subr.bf16.mxu1 %v1017_v33  ;;  %v617_v33 = vld [vmem:[%s1708_s8 + $0x100] sm:$0xff] }
  0xf5   :  { %v1034_v36 = vpack.c.bf16 %v618_v34, %v617_v33 }
  0xf7   :  { %1020 = vmatpush3.bf16.msra.mxu1 %v1019_v38  ;;  %v1037_v38 = vpack.c.bf16 %v620_v37, %v619_v35 }
  0xf8   :  { %1022 = vmatprep.subr.bf16.mxu1 %v1021_v39  ;;  %v621_v39 = vld [vmem:[%s1708_s8 + $0x120] sm:$0xff] }
  0xf9   :  { %v1040_v41 = vpack.c.bf16 %v622_v40, %v621_v39 }
  0xfb   :  { %1024 = vmatpush3.bf16.msra.mxu1 %v1023_v44  ;;  %v1043_v44 = vpack.c.bf16 %v624_v43, %v623_v42 }
  0xfc   :  { %1026 = vmatprep.subr.bf16.mxu1 %v1025_v45  ;;  %v421_v45 = vld [vmem:[%s1710_s7] sm:$0x7] }
  0xfd   :  { %v426_v46 = vrot.slane %v421_v45, %v1466_v52 }
  0xff   :  { %1028 = vmatpush3.bf16.msra.mxu1 %v1027_v26 }
 0x100   :  { %1030 = vmatprep.subr.bf16.mxu1 %v1029_v29 }
 0x103   :  { %1032 = vmatpush3.bf16.msra.mxu1 %v1031_v32 }
 0x1b9   :  { %v342_v53 = vpop.f32.mrb[0].mxu1 }
 0x1ba   :  { %v344_v55 = vpop.f32.mrb[1].mxu1  ;;  %v359_v58 = vadd.f32 %v352_v48, %v342_v53 }
 0x1bb   :  { %v360_v56 = vadd.f32 %v356_v47, %v344_v55 }
 0x1bd   :  { %784 = vmatprep.mubr.msk.f32.mxu0 %vm56_vm0, %v360_v56 }
 0x1be   :  { %506 = vmatmul.mubr.f32.vlgmr.msra.gmra.mrb[2].mxu0 %v359_v58 }
 0x1bf   :  { %973 = vmatpush1.bf16.msra.mxu0 %v972_v57  ;;  %785 = vmatprep.mubr.msk.f32.mxu0 %vm56_vm0, %v360_v56  ;;  %v433_v56 = vsub.s32 2, %v1463_v51 }
 0x1c0   :  { %974 = vmatprep.subr.bf16.mxu0 %v1051_v6 }
 0x1c1   :  { %v434_v57 = vrot.slane %v421_v45, %v433_v56 }
 0x1c3   :  { %976 = vmatpush1.bf16.msra.mxu0 %v975_v61 }
 0x1c4   :  { %977 = vmatprep.subr.bf16.mxu0 %v1051_v6 }
 0x1c7   :  { %979 = vmatpush1.bf16.msra.mxu0 %v978_v0 }
 0x1c8   :  { %980 = vmatprep.subr.bf16.mxu0 %v1051_v6 }
 0x1cb   :  { %982 = vmatpush1.bf16.msra.mxu0 %v981_v4 }
 0x1cc   :  { %983 = vmatprep.subr.bf16.mxu0 %v1051_v6 }
 0x1cf   :  { %985 = vmatpush1.bf16.msra.mxu0 %v984_v8 }
 0x1d0   :  { %986 = vmatprep.subr.bf16.mxu0 %v1051_v6 }
 0x1d3   :  { %988 = vmatpush1.bf16.msra.mxu0 %v987_v11 }
 0x1d4   :  { %989 = vmatprep.subr.bf16.mxu0 %v1051_v6 }
 0x1d7   :  { %991 = vmatpush1.bf16.msra.mxu0 %v990_v14 }
 0x1d8   :  { %992 = vmatprep.subr.bf16.mxu0 %v1051_v6 }
 0x1db   :  { %994 = vmatpush1.bf16.msra.mxu0 %v993_v17 }
 0x1dc   :  { %995 = vmatprep.subr.bf16.mxu0 %v1051_v6 }
 0x1df   :  { %997 = vmatpush1.bf16.msra.mxu0 %v996_v20 }
 0x1e0   :  { %998 = vmatprep.subr.bf16.mxu0 %v1051_v6 }
 0x1e3   :  { %1000 = vmatpush1.bf16.msra.mxu0 %v999_v23 }
 0x1e4   :  { %1033 = vmatprep.subr.bf16.mxu0 %v1051_v6 }
 0x1e6   :  { %577 = vmatmul.mubr.f32.vlgmr.msra.gmra.mrb[4].mxu0 %v359_v58 }
 0x1e7   :  { %1035 = vmatpush3.bf16.msra.mxu0 %v1034_v36  ;;  %848 = vmatprep.mubr.msk.f32.mxu0 %vm1052_vm1, %v1050_v3 }
 0x1e8   :  { %1036 = vmatprep.subr.bf16.mxu0 %v1051_v6 }
 0x1eb   :  { %1038 = vmatpush3.bf16.msra.mxu0 %v1037_v38 }
 0x1ec   :  { %1039 = vmatprep.subr.bf16.mxu0 %v1051_v6 }
 0x1ef   :  { %1041 = vmatpush3.bf16.msra.mxu0 %v1040_v41 }
 0x1f0   :  { %1042 = vmatprep.subr.bf16.mxu0 %v1051_v6  ;;  %v430_v6 = vrot.slane %v421_v45, %v1472_v54 }
 0x1f3   :  { %1044 = vmatpush3.bf16.msra.mxu0 %v1043_v44 }
 0x291   :  { %v507_v47 = vpop.f32.mrb[2].mxu0 }
 0x292   :  { %v508_v48 = vadd.f32 %v507_v47, %v426_v46  ;;  %v509_v49 = vpop.f32.mrb[3].mxu0 }
 0x293   :  { %v510_v50 = vadd.f32 %v509_v49, %v430_v6 }
 0x294   :  { %v582_v55 = vmax.f32 %v508_v48, 0.0 }
 0x295   :  { %v583_v53 = vmax.f32 %v510_v50, 0.0 }
 0x297   :  { %700 = vmatprep.mubr.f32.mxu1 %v583_v53 }
 0x298   :  { %701 = vmatmul.mubr.f32.vlgmr.msra.gmra.mrb[2].mxu1 %v582_v55 }
 0x2b9   :  { %v578_v3 = vpop.f32.mrb[4].mxu0 }
 0x2ba   :  { %v579_v58 = vadd.f32 %v578_v3, %v434_v57  ;;  %v580_v59 = vpop.f32.mrb[5].mxu0 }
 0x2bc   :  { %v584_v60 = vmax.f32 %v579_v58, 0.0 }
 0x2be   :  { %849 = vmatmul.mubr.msk.f32.vlgmr.msra.gmra.mrb[6].mxu0 %vm632_vm2, %v584_v60 }
 0x36b   :  { %v820_v52 = vpop.f32.mrb[2].mxu1 }
 0x36c   :  { %v821_v61 = vpop.f32.mrb[3].mxu1 }
 0x36d   :  { %v822_v54 = vadd.f32 %v821_v61, %v820_v52 }
 0x36f   :  { %v703_v63 = vadd.f32 %v822_v54, %v786_v62 }
 0x391   :  { %v772_v0 = vpop.f32.mrb[6].mxu0 }
 0x392   :  { %v773_v1 = vadd.f32 %v772_v0, %v703_v63  ;;  %v850_v2 = vpop.f32.mrb[7].mxu0 }
 0x394   :  { %777 = vst.msk [vmem:[%s1712_s10] sm:$0xff] %vm776_vm3, %v773_v1 }

</bundles_post_ra>
